<compile_context>
chip_gen: v7x
topology: tpu7x:2x2x1
jax: 0.10.0
libtpu: 0.0.40
codegen_flags: <defaults>
</compile_context>

<pallas_src>
import functools

import jax
import jax.numpy as jnp
from jax.experimental import pallas as pl
from jax.experimental.pallas import tpu as pltpu


def _residual_block_kernel(x_ref, xm_ref, w_ref, o_ref, *, reps):
    # x_ref:  (bm, H)   original-dtype activations (for the residual / concat)
    # xm_ref: (bm, H)   activations pre-cast to the weight dtype (MXU operand)
    # w_ref:  (H, tn)   head-group slab of W, already in [H, N] layout
    # o_ref:  (bm, tn)  output slab (lane-dense, multiple of 128 wide)
    z = jnp.dot(xm_ref[...], w_ref[...], preferred_element_type=jnp.float32)
    silu = z * jax.nn.sigmoid(z)                     # SiLU in f32 (VPU + EUP)
    resid = jnp.tile(x_ref[...].astype(jnp.float32), (1, reps))
    o_ref[...] = (resid + silu).astype(o_ref.dtype)


def _vmem_capacity_bytes() -> int:
    """Physical VMEM per core; conservative (v7x = 64 MiB) fallback."""
    try:
        info = pltpu.get_tpu_info()
        cap = getattr(info, "vmem_capacity_bytes", None)
        if cap:
            return int(cap)
    except Exception:
        pass
    return 64 * 1024 * 1024


def _choose_batch_tile(B: int, max_bm: int = 256) -> int:
    if B <= max_bm:
        return B
    for bm in range(max_bm, 7, -1):          # largest divisor, multiple of 8
        if B % bm == 0 and bm % 8 == 0:
            return bm
    return B                                  # fall back to full batch


def _choose_heads_per_step(
    num_of_heads: int,
    H: int,
    bm: int,
    w_itemsize: int,
    x_itemsize: int,
    out_itemsize: int,
    budget_bytes: int,
) -> int:
    """Largest divisor of num_of_heads whose full double-buffered footprint fits.

    Prefers a divisor giving an even step count >= 2 so the parallel grid axis
    can be sharded across both TensorCores on v7x.
    """
    # Grid-invariant x blocks (f32 + mxu-dtype copies), conservatively x2 each.
    fixed = 2 * bm * H * x_itemsize + 2 * bm * H * w_itemsize
    fits = []
    for d in range(1, num_of_heads + 1):
        if num_of_heads % d:
            continue
        tn = d * H
        if tn % 128 != 0 and d != num_of_heads:
            continue                           # keep lane-dense / (8,128)-legal tiles
        w_slab = H * tn * w_itemsize           # weight slab, double-buffered
        o_slab = bm * tn * out_itemsize        # output slab, double-buffered
        footprint = fixed + 2 * w_slab + 2 * o_slab
        if footprint <= budget_bytes:
            fits.append(d)
    if not fits:
        raise ValueError(
            "ResidualBlock Pallas kernel: a single head's weight slab does not "
            "fit the VMEM budget (K-tiling not implemented yet)."
        )
    even = [d for d in fits
            if (num_of_heads // d) >= 2 and (num_of_heads // d) % 2 == 0]
    return max(even) if even else max(fits)


def residual_block(x: jax.Array, weight_hn: jax.Array, num_of_heads: int) -> jax.Array:
    """Medusa ResidualBlock forward.

    x:         [B, H] activations.
    weight_hn: [H, H*num_of_heads] -- the PyTorch Linear weight [N, H]
               pre-transposed ONCE at model-load time (and typically cast to
               bf16 there as well).
    """
    B, H = x.shape
    N = H * num_of_heads
    assert weight_hn.shape == (H, N), (weight_hn.shape, (H, N))

    w_itemsize = weight_hn.dtype.itemsize
    x_itemsize = x.dtype.itemsize
    out_itemsize = x.dtype.itemsize

    # Generation-aware VMEM budget: 96 MiB on v5e/v6e (128 MiB physical),
    # 48 MiB on v7x (64 MiB physical). Leave headroom for compiler scratch.
    vmem_limit_bytes = int(0.75 * _vmem_capacity_bytes())
    budget = vmem_limit_bytes - 2 * 1024 * 1024

    bm = _choose_batch_tile(B)
    hps = _choose_heads_per_step(
        num_of_heads, H, bm, w_itemsize, x_itemsize, out_itemsize, budget)
    num_head_steps = num_of_heads // hps
    num_batch_steps = B // bm if B % bm == 0 else 1
    if num_batch_steps == 1:
        bm = B
    tn = hps * H

    # Hoist the per-step MXU cast out of the kernel.
    x_mxu = x.astype(weight_hn.dtype)

    kernel = functools.partial(_residual_block_kernel, reps=hps)

    cost = pl.CostEstimate(
        flops=2 * B * H * N,
        transcendentals=B * N,
        bytes_accessed=(num_batch_steps * H * N * w_itemsize
                        + B * H * (x_itemsize + w_itemsize)
                        + B * N * out_itemsize),
    )

    return pl.pallas_call(
        kernel,
        out_shape=jax.ShapeDtypeStruct((B, N), x.dtype),
        grid_spec=pltpu.PrefetchScalarGridSpec(
            num_scalar_prefetch=0,
            grid=(num_batch_steps, num_head_steps),
            in_specs=[
                # f32 x tile for the residual (grid-invariant along head axis).
                pl.BlockSpec((bm, H), lambda bi, j: (bi, 0)),
                # bf16 x tile for the MXU (grid-invariant along head axis).
                pl.BlockSpec((bm, H), lambda bi, j: (bi, 0)),
                # Head-group slab j of W in [H, N] layout -> no in-kernel transpose.
                pl.BlockSpec((H, tn), lambda bi, j: (0, j)),
            ],
            out_specs=pl.BlockSpec((bm, tn), lambda bi, j: (bi, j)),
        ),
        compiler_params=pltpu.CompilerParams(
            dimension_semantics=("parallel", "parallel"),
            vmem_limit_bytes=vmem_limit_bytes,
        ),
        cost_estimate=cost,
    )(x, x_mxu, weight_hn)


if __name__ == "__main__":
    # Small shapes consistent with the module: batch=8, hidden=128, heads=4.
    batch = 8
    hidden_size = 128
    num_of_heads = 4
    num_layers = 1  # unused by the forward pass (matches the PyTorch module)

    key = jax.random.PRNGKey(0)
    kx, kw = jax.random.split(key)
    x = jax.random.normal(kx, (batch, hidden_size), dtype=jnp.float32)

    # nn.Linear(hidden, hidden*heads, bias=False).weight: [hidden*heads, hidden].
    weight_pt = jax.random.normal(
        kw, (hidden_size * num_of_heads, hidden_size), dtype=jnp.float32
    ) * (1.0 / jnp.sqrt(hidden_size))

    # One-time "model load" prep: transpose to [H, N] and cast to bf16 so the
    # kernel streams a layout-friendly, half-width weight from HBM every call.
    weight_hn = jnp.asarray(weight_pt.T, dtype=jnp.bfloat16)

    out = residual_block(x, weight_hn, num_of_heads)
    out = jax.block_until_ready(out)

    # Pure-JAX reference with the exact same bf16 operands / f32 accumulation.
    # (Numerics intentionally use bf16 matmul operands; diverges slightly from
    # a pure-f32 PyTorch forward -- hence the 1e-2 tolerance.)
    z_ref = jnp.dot(x.astype(jnp.bfloat16), weight_hn,
                    preferred_element_type=jnp.float32)
    ref = jnp.tile(x, (1, num_of_heads)) + z_ref * jax.nn.sigmoid(z_ref)

    assert out.shape == (batch, hidden_size * num_of_heads)
    assert jnp.allclose(out, ref, atol=1e-2, rtol=1e-2), "mismatch vs reference"

    print("KERNEL_OK")
</pallas_src>

<mosaic_0001>
module attributes {stable_mosaic.version = 11 : i64} {
  func.func @_residual_block_kernel(%arg0: i32, %arg1: i32, %arg2: memref<8x128xf32, #tpu.memory_space<vmem>>, %arg3: memref<8x128xbf16, #tpu.memory_space<vmem>>, %arg4: memref<128x256xbf16, #tpu.memory_space<vmem>>, %arg5: memref<8x256xf32, #tpu.memory_space<vmem>>) attributes {dimension_semantics = [#tpu.dimension_semantics<parallel>, #tpu.dimension_semantics<parallel>], iteration_bounds = array<i64: 1, 2>, scalar_prefetch = 0 : i64, scratch_operands = 0 : i64, tpu.core_type = #tpu.core_type<tc>, window_params = [{transform_indices = @transform_0, window_bounds = array<i64: 8, 128>}, {transform_indices = @transform_1, window_bounds = array<i64: 8, 128>}, {transform_indices = @transform_2, window_bounds = array<i64: 128, 256>}, {transform_indices = @transform_3, window_bounds = array<i64: 8, 256>}]} {
    %c0 = arith.constant 0 : index
    %c0_0 = arith.constant 0 : index
    %0 = vector.load %arg3[%c0, %c0_0] : memref<8x128xbf16, #tpu.memory_space<vmem>>, vector<8x128xbf16>
    %c0_1 = arith.constant 0 : index
    %c0_2 = arith.constant 0 : index
    %1 = vector.load %arg4[%c0_1, %c0_2] : memref<128x256xbf16, #tpu.memory_space<vmem>>, vector<128x256xbf16>
    %cst = arith.constant dense<0.000000e+00> : vector<8x256xf32>
    %2 = tpu.matmul %0, %1, %cst {dimension_numbers = #tpu.dot_dimension_numbers<[1], [0], [0], [1], [0, 0, 1, 1], [], []>} : vector<8x128xbf16>, vector<128x256xbf16>, vector<8x256xf32> -> vector<8x256xf32>
    %3 = arith.negf %2 : vector<8x256xf32>
    %4 = math.exp %3 : vector<8x256xf32>
    %cst_3 = arith.constant 1.000000e+00 : f32
    %5 = vector.broadcast %cst_3 : f32 to vector<8x256xf32>
    %6 = arith.addf %5, %4 : vector<8x256xf32>
    %7 = arith.divf %5, %6 : vector<8x256xf32>
    %8 = arith.mulf %2, %7 : vector<8x256xf32>
    %c0_4 = arith.constant 0 : index
    %c0_5 = arith.constant 0 : index
    %9 = vector.load %arg2[%c0_4, %c0_5] : memref<8x128xf32, #tpu.memory_space<vmem>>, vector<8x128xf32>
    %10 = tpu.concatenate %9, %9 in 1 : vector<8x128xf32>, vector<8x128xf32> -> vector<8x256xf32>
    %11 = arith.addf %10, %8 : vector<8x256xf32>
    %c0_6 = arith.constant 0 : index
    %c0_7 = arith.constant 0 : index
    %12 = vector.load %arg5[%c0_6, %c0_7] : memref<8x256xf32, #tpu.memory_space<vmem>>, vector<8x256xf32>
    tpu.vector_store %arg5[%c0_6, %c0_7], %11 {strides = array<i32>} : memref<8x256xf32, #tpu.memory_space<vmem>>, vector<8x256xf32>,
    return
  }
  func.func @transform_0(%arg0: i32, %arg1: i32) -> (i32, i32) {
    %c0_i32 = arith.constant 0 : i32
    %c0_i32_0 = arith.constant 0 : i32
    return %arg0, %c0_i32 : i32, i32
  }
  func.func @transform_1(%arg0: i32, %arg1: i32) -> (i32, i32) {
    %c0_i32 = arith.constant 0 : i32
    %c0_i32_0 = arith.constant 0 : i32
    return %arg0, %c0_i32 : i32, i32
  }
  func.func @transform_2(%arg0: i32, %arg1: i32) -> (i32, i32) {
    %c0_i32 = arith.constant 0 : i32
    %c0_i32_0 = arith.constant 0 : i32
    return %c0_i32, %arg1 : i32, i32
  }
  func.func @transform_3(%arg0: i32, %arg1: i32) -> (i32, i32) {
    %c0_i32 = arith.constant 0 : i32
    return %arg0, %arg1 : i32, i32
  }
}

</mosaic_0001>

<bundles_post_ra>
// kernel: tpu_custom_call.1
= control target key start
LH: loop header
LB: loop body
LE: loop exit
PB: predicated region body
PF: predicated region fallthrough
CT: control target
= control target key end

     0   :  { %8 = vsyncpa [#allocation3], 0  ;;  %s1155_s0 = inlined_call_operand.hbm [shape: f32[8,128], index: 0, kind: input, shape index: {}]   ;;  %s1156_s1 = inlined_call_operand.hbm [shape: bf16[8,128], index: 1, kind: input, shape index: {}]   ;;  %s1157_s2 = inlined_call_operand.hbm [shape: bf16[128,512], index: 2, kind: input, shape index: {}]   ;;  %s1158_s3 = inlined_call_operand.hbm [shape: f32[8,512], index: 3, kind: output, shape index: {}]  }
   0x1   :  { %9 = vsyncpa [#allocation6], 0 }
   0x2   :  { %10 = vsyncpa [#allocation4], 0 }
   0x3   :  { %12 = vsyncpa [#allocation4 + $0x1], 0  ;;  %s885_s12 = smov 0   ;;  %s887_s13 = smov 0  }
   0x4   :  { %s889_s14 = smov 0   ;;  %s891_s15 = smov 0  }
   0x5   :  { %s893_s16 = smov 0   ;;  %s895_s17 = smov 0  }
   0x6 LB: > { %s916_s18 = sadd.s32 4294967295, %s855_s17   ;;  %s522_s19 = sadd.s32 4294967294, %s855_s17   ;;  %s855_s17 = sphi %s895_s17, %s18_s17   ;;  %s851_s16 = sphi %s893_s16, %s1185_s16   ;;  %s847_s15 = sphi %s891_s15, %s1184_s15   ;;  %s843_s14 = sphi %s889_s14, %s1183_s14   ;;  %s839_s13 = sphi %s887_s13, %s1182_s13   ;;  %s835_s12 = sphi %s885_s12, %s1181_s12  }
   0x7   : > { %s89_s20 = sadd.s32 1, %s843_s14  ;;  %p96_p0 = scmp.ne.s32.totalorder %s843_s14, %s839_s13 }
   0x8   : > { %p97_p1 = scmp.eq.s32.totalorder %s855_s17, 0  ;;  %p102_p2 = scmp.ne.s32.totalorder %s839_s13, %s835_s12 }
   0x9   : > { %p1159_p3 = scmp.eq.s32.totalorder %s916_s18, 0  ;;  %p128_p4 = scmp.eq.s32.totalorder %s916_s18, 1 }
   0xa   : > { %p927_p5 = por %p97_p1, %p96_p0  ;;  %p134_p6 = scmp.eq.s32.totalorder %s522_s19, 1 }
   0xb   : > { %p933_p7 = por %p1159_p3, %p102_p2  ;;  %p937_p8 = por %p128_p4, %p96_p0 }
   0xc   : > { %p941_p9 = por %p134_p6, %p102_p2  ;;  %p523_p10 = scmp.ge.s32.totalorder %s855_s17, 1 }
   0xd   : > { %s1165_s22 = scalar_select %p933_p7, 1, 0 }
   0xe   : > { %s1166_s23 = scalar_select %p937_p8, 1, 0 }
   0xf   : > { %s1167_s24 = scalar_select %p941_p9, 1, 0 }
  0x10   : > { %p141_p11 = scmp.lt.s32.totalorder %s855_s17, 3  ;;  %s857_s26 = smov [#allocation2]  }
  0x11   : > { %s156_s27 = sshll.u32 %s857_s26, 4  ;;  %p589_p1 = scmp.lt.s32.totalorder %s855_s17, 2  ;;  %s157_s27 = int_to_ptr.vmem [resolvable:$true] %s156_s27 }
  0x12   : > { %p948_p13 = pnand %p523_p10, %p141_p11  ;;  %s858_s29 = smov [#allocation5]  }
  0x13   : > { %p957_p4 = pnand %p589_p1, %p927_p5  ;;  %s169_s30 = sshll.u32 %s858_s29, 4  ;;  %s967_s30 = int_to_ptr.vmem [resolvable:$true] %s169_s30 }
  0x14   : > { %s1168_s25 = scalar_select %p948_p13, 1, 0 }
  0x15   : > { %p572_p0 = pneg %p948_p13  ;;  %s679_s7 = scalar_lea.hbm %s1155_s0, 128 }
  0x16   : > { %s1169_s28 = scalar_select %p957_p4, 1, 0 }
  0x17   : > { %p963_p2 = pnand %p572_p0, %p1159_p3  ;;  %p680_p5 = scmp.ne.s32.totalorder %s1155_s0, %s679_s7 }
  0x18   : > { %p686_p1 = scmp.lt.u32.totalorder %s679_s7, %s1155_s0 }
  0x19   : > { %p681_p6 = pneg %p963_p2 }
  0x1b   : > { %p682_p10 = pnand %p681_p6, %p680_p5 }
  0x1d   : > { %p683_p11 = pneg %p682_p10 }
  0x1f   : > { %p688_p0 = pnand %p686_p1, %p683_p11 }
  0x21   : > { %691 = shalt.err (!%p688_p0)
}
  0x22   : > { %s692_s19 = scalar_lea.vmem %s157_s27, 128  ;;  %p700_p8 = scmp.lt.s32.totalorder %s157_s27, %s157_s27 }
  0x23   : > { %p693_p12 = scmp.ne.s32.totalorder %s157_s27, %s692_s19  ;;  %p701_p7 = scmp.lt.s32.totalorder %s692_s19, %s692_s19 }
  0x25   : > { %p695_p3 = pnand %p693_p12, %p681_p6  ;;  %p702_p13 = por %p701_p7, %p700_p8 }
  0x27   : > { %p696_p9 = pneg %p695_p3 }
  0x29   : > { %p703_p4 = pnand %p702_p13, %p696_p9 }
  0x2b   : > { %706 = shalt.err (!%p703_p4)
}
  0x2c   : > { %575 = dma.hbm_to_vmem [thread:$0]  (!%p963_p2), %s1155_s0, 128, %s157_s27, [#allocation3]  }
  0x2d   : > { %s707_s6 = scalar_lea.hbm %s1156_s1, 64 }
  0x2e   : > { %p708_p3 = scmp.ne.s32.totalorder %s1156_s1, %s707_s6  ;;  %p714_p9 = scmp.lt.u32.totalorder %s707_s6, %s1156_s1 }
  0x30   : > { %p710_p7 = pnand %p708_p3, %p681_p6 }
  0x32   : > { %p711_p8 = pneg %p710_p7 }
  0x34   : > { %p716_p12 = pnand %p714_p9, %p711_p8 }
  0x36   : > { %719 = shalt.err (!%p716_p12)
}
  0x37   : > { %s720_s27 = scalar_lea.vmem %s967_s30, 64  ;;  %p728_p10 = scmp.lt.s32.totalorder %s967_s30, %s967_s30 }
  0x38   : > { %p721_p13 = scmp.ne.s32.totalorder %s967_s30, %s720_s27  ;;  %p729_p11 = scmp.lt.s32.totalorder %s720_s27, %s720_s27 }
  0x3a   : > { %p723_p4 = pnand %p721_p13, %p681_p6  ;;  %p730_p1 = por %p729_p11, %p728_p10 }
  0x3c   : > { %p724_p5 = pneg %p723_p4 }
  0x3e   : > { %p731_p0 = pnand %p730_p1, %p724_p5 }
  0x40   : > { %734 = shalt.err (!%p731_p0)
}
  0x41   : > { %578 = dma.hbm_to_vmem [thread:$0]  (!%p963_p2), %s1156_s1, 64, %s967_s30, [#allocation6]  }
  0x42   : > { %s27_s21 = sadd.s32 1, %s851_s16  ;;  %s180_s26 = sand.u32 1, %s855_s17  }
  0x43   : > { %p28_p6 = scmp.ge.s32.totalorder %s27_s21, 2  ;;  %s182_s29 = sand.u32 1, %s843_s14  }
  0x44   : > { %s558_s5 = sshll.u32 %s851_s16, 7  ;;  %s527_s4 = sshll.u32 %s182_s29, 7 }
  0x45   : > { %s1187_s21 = smov (%p28_p6, %s27_s21), 0  ;;  %s1025_s8 = scalar_lea.hbm %s1157_s2, %s558_s5 }
  0x46   : > { %s86_s30 = ssub.s32 %s851_s16, %s1187_s21  ;;  %s184_s9 = scalar_lea.vmem [#allocation7], %s527_s4 }
  0x47   : > { %p87_p2 = scmp.eq.s32.totalorder %s86_s30, 0  ;;  %s191_s10 = sshll.u32 %s184_s9, 4  ;;  %s1029_s10 = int_to_ptr.vmem [resolvable:$true] %s191_s10 }
  0x48   : > { %s1036_s11 = scalar_lea.sflag [#allocation3], %s180_s26  ;;  %s735_s19 = scalar_lea.hbm %s1025_s8, 2048 }
  0x49   : > { %s1034_s27 = scalar_select %p87_p2, %s843_s14, %s89_s20  }
  0x4a   : > { %p736_p3 = scmp.ne.s32.totalorder %s1025_s8, %s735_s19  ;;  %p1171_p7 = scmp.ne.s32.totalorder %s1169_s28, 0 }
  0x4b   : > { %s740_s4 = scalar_lea.hbm %s1157_s2, 4096  ;;  %p741_p13 = scmp.lt.u32.totalorder %s1025_s8, %s1157_s2 }
  0x4c   : > { %p737_p8 = pneg %p1171_p7  ;;  %p742_p4 = scmp.lt.u32.totalorder %s740_s4, %s735_s19 }
  0x4d   : > { %p744_p10 = scmp.lt.u32.totalorder %s735_s19, %s1025_s8 }
  0x4e   : > { %p738_p9 = pnand %p737_p8, %p736_p3  ;;  %p743_p5 = por %p742_p4, %p741_p13 }
  0x50   : > { %p739_p12 = pneg %p738_p9  ;;  %p745_p11 = por %p744_p10, %p743_p5 }
  0x52   : > { %p746_p1 = pnand %p745_p11, %p739_p12 }
  0x54   : > { %749 = shalt.err (!%p746_p1)
}
  0x55   : > { %s750_s20 = scalar_lea.vmem %s1029_s10, 2048  ;;  %s859_s26 = smov [#allocation7]  }
  0x56   : > { %p751_p0 = scmp.ne.s32.totalorder %s1029_s10, %s750_s20  ;;  %s755_s30 = sshll.u32 %s859_s26, 4  ;;  %s756_s30 = int_to_ptr.vmem [resolvable:$false] %s755_s30 }
  0x57   : > { %s757_s9 = scalar_lea.vmem %s756_s30, 4096  ;;  %p758_p3 = scmp.lt.s32.totalorder %s1029_s10, %s756_s30 }
  0x58   : > { %p753_p6 = pnand %p751_p0, %p737_p8  ;;  %p759_p9 = scmp.lt.s32.totalorder %s757_s9, %s750_s20 }
  0x5a   : > { %p754_p2 = pneg %p753_p6  ;;  %p760_p13 = por %p759_p9, %p758_p3 }
  0x5c   : > { %p761_p4 = pnand %p760_p13, %p754_p2 }
  0x5e   : > { %764 = shalt.err (!%p761_p4)
}
  0x5f   : > { %s860_s19 = smov 256   ;;  %s861_s29 = smov 128  }
  0x60   : > { %s862_s5 = smov 8   ;;  %p1172_p8 = scmp.ne.s32.totalorder %s1168_s25, 0 }
  0x61   : > { %582 = dma.hbm_to_vmem [thread:$0]  (!%p1171_p7), %s1025_s8, 2048, %s1029_s10, %s1036_s11, %s860_s19, %s861_s29, %s862_s5  }
  0x62   : > { %203 = sbr.rel (%p1172_p8) target bundleno = 405 (0x195), region = 32  ;;  %p1173_p12 = scmp.eq.s32.totalorder (!%p1172_p8), %s916_s18, 0 }
  0x69   : > { %818 = dma.done.wait (%p1173_p12), [#allocation3], 128   ;;  %p1174_p5 = pmov %p1173_p12 }
  0x6b   : > { %820 = vsyncadd (%p1174_p5), [#allocation3], 4294967168  ;;  %p1175_p10 = pmov %p1174_p5 }
  0x6c   : > { %p1176_p11 = pmov %p1174_p5 }
  0x6d   : > { %822 = dma.done.wait (%p1175_p10), [#allocation6], 64  }
  0x6e   : > { %824 = vsyncadd (%p1176_p11), [#allocation6], 4294967232  ;;  %s213_s28 = sand.u32 1, %s916_s18   ;;  %s1076_s8 = sand.u32 1, %s839_s13  }
  0x6f   : > { %s533_s25 = sshll.u32 %s1076_s8, 7  ;;  %s214_s10 = scalar_lea.sflag [#allocation3], %s213_s28 }
  0x70   : > { %s1079_s11 = scalar_lea.vmem [#allocation7], %s533_s25  ;;  %p1177_p7 = scmp.ne.s32.totalorder %s1165_s22, 0 }
  0x72   : > { %826 = dma.done.wait (%p1177_p7), %s214_s10, 2048  }
  0x73   : > { %828 = vsyncadd (%p1177_p7), %s214_s10, 4294965248  ;;  %v863_v0 = vmov 0   ;;  %v647_v1 = vld [vmem:[%s1079_s11 + $0x4] ss:$8 sps:$4 sm:$0xff]   ;;  %v649_v2 = vld [vmem:[%s1079_s11] ss:$8 sps:$4 sm:$0xff]  }
  0x74   : > { %372 = vmatprep.mubr.bf16.mxu0 %v863_v0  ;;  %340 = vmatprep.subr.bf16.mxu0 %v647_v1  ;;  %v650_v3 = vld [vmem:[%s1079_s11 + $0x14] ss:$8 sps:$4 sm:$0xff]   ;;  %v652_v4 = vld [vmem:[%s1079_s11 + $0x10] ss:$8 sps:$4 sm:$0xff]   ;;  %v653_v5 = vld [vmem:[%s1079_s11 + $0x24] ss:$8 sps:$4 sm:$0xff]  }
  0x75   : > { %341 = vmatpush1.bf16.msra.mxu0 %v649_v2  ;;  %v655_v6 = vld [vmem:[%s1079_s11 + $0x20] ss:$8 sps:$4 sm:$0xff]   ;;  %v656_v7 = vld [vmem:[%s1079_s11 + $0x34] ss:$8 sps:$4 sm:$0xff]   ;;  %v658_v8 = vld [vmem:[%s1079_s11 + $0x30] ss:$8 sps:$4 sm:$0xff]  }
  0x76   : > { %342 = vmatprep.subr.bf16.mxu0 %v650_v3  ;;  %v659_v9 = vld [vmem:[%s1079_s11 + $0x44] ss:$8 sps:$4 sm:$0xff]   ;;  %v661_v10 = vld [vmem:[%s1079_s11 + $0x40] ss:$8 sps:$4 sm:$0xff]   ;;  %v662_v11 = vld [vmem:[%s1079_s11 + $0x54] ss:$8 sps:$4 sm:$0xff]  }
  0x77   : > { %v664_v12 = vld [vmem:[%s1079_s11 + $0x50] ss:$8 sps:$4 sm:$0xff]   ;;  %v665_v13 = vld [vmem:[%s1079_s11 + $0x64] ss:$8 sps:$4 sm:$0xff]   ;;  %v667_v14 = vld [vmem:[%s1079_s11 + $0x60] ss:$8 sps:$4 sm:$0xff]  }
  0x78   : > { %v668_v15 = vld [vmem:[%s1079_s11 + $0x74] ss:$8 sps:$4 sm:$0xff]   ;;  %v670_v16 = vld [vmem:[%s1079_s11 + $0x70] ss:$8 sps:$4 sm:$0xff]   ;;  %s534_s18 = sshll.u32 %s1076_s8, 4  ;;  %s559_s22 = sshll.u32 %s847_s15, 8 }
  0x79   : > { %343 = vmatpush1.bf16.msra.mxu0 %v652_v4  ;;  %v243_v17 = vld [vmem:[#allocation5] sm:$0xf]  ;;  %v395_v29 = vld [vmem:[#allocation2] sm:$0xff]  ;;  %s239_s4 = scalar_lea.vmem [#allocation8], %s534_s18  ;;  %s1106_s26 = scalar_lea.hbm %s1158_s3, %s559_s22 }
  0x7a   : > { %344 = vmatprep.subr.bf16.mxu0 %v653_v5  ;;  %s417_s6 = sshll.u32 %s239_s4, 4  ;;  %s401_s30 = scalar_lea.sflag [#allocation4], %s1076_s8  ;;  %s1108_s6 = int_to_ptr.vmem [resolvable:$true] %s417_s6 }
  0x7b   : > { %s765_s9 = scalar_lea.vmem %s1108_s6, 256  ;;  %p1178_p0 = scmp.ne.s32.totalorder %s1166_s23, 0 }
  0x7c   : > { %p766_p1 = scmp.ne.s32.totalorder %s1108_s6, %s765_s9  ;;  %s864_s15 = smov [#allocation8]  }
  0x7d   : > { %345 = vmatpush1.bf16.msra.mxu0 %v655_v6  ;;  %s769_s19 = sshll.u32 %s864_s15, 4  ;;  %s770_s19 = int_to_ptr.vmem [resolvable:$false] %s769_s19 }
  0x7e   : > { %346 = vmatprep.subr.bf16.mxu0 %v656_v7  ;;  %p767_p6 = pnand %p766_p1, %p1178_p0  ;;  %s771_s29 = scalar_lea.vmem %s770_s19, 512 }
  0x7f   : > { %p772_p3 = scmp.lt.s32.totalorder %s1108_s6, %s770_s19  ;;  %p773_p9 = scmp.lt.s32.totalorder %s771_s29, %s765_s9 }
  0x80   : > { %p768_p2 = pneg %p767_p6 }
  0x81   : > { %347 = vmatpush1.bf16.msra.mxu0 %v658_v8  ;;  %p774_p13 = por %p773_p9, %p772_p3 }
  0x82   : > { %348 = vmatprep.subr.bf16.mxu0 %v659_v9 }
  0x83   : > { %p775_p4 = pnand %p774_p13, %p768_p2 }
  0x85   : > { %349 = vmatpush1.bf16.msra.mxu0 %v661_v10 }
  0x86   : > { %350 = vmatprep.subr.bf16.mxu0 %v662_v11 }
  0x89   : > { %351 = vmatpush1.bf16.msra.mxu0 %v664_v12 }
  0x8a   : > { %352 = vmatprep.subr.bf16.mxu0 %v665_v13 }
  0x8d   : > { %353 = vmatpush1.bf16.msra.mxu0 %v667_v14 }
  0x8e   : > { %354 = vmatprep.subr.bf16.mxu0 %v668_v15 }
  0x91   : > { %355 = vmatpush1.bf16.msra.mxu0 %v670_v16 }
  0x94   : > { %373 = vmatmul.mubr.bf16.vlgmr.msra.gmra.mrb[0].mxu0 %v243_v17 }
 0x167   : > { %v374_v18 = vpop.f32.mrb[0].mxu0 }
 0x168   : > { %v551_v19 = vmul.f32 -1.442695, %v374_v18  ;;  %v376_v20 = vpop.f32.mrb[1].mxu0 }
 0x169   : > { %v552_v21 = vmul.f32 -1.442695, %v376_v20  ;;  %v378_v22 = vpop.f32.mrb[2].mxu0 }
 0x16a   : > { %671 = vpow2.f32 %v551_v19  ;;  %v379_v23 = vpop.f32.mrb[3].mxu0 }
 0x16b   : > { %673 = vpow2.f32 %v552_v21 }
 0x174   : > { %v672_v24 = vpop.eup %671 }
 0x175   : > { %v674_v25 = vpop.eup %673  ;;  %v387_v26 = vadd.f32 1.0, %v672_v24 }
 0x176   : > { %v388_v27 = vadd.f32 1.0, %v674_v25 }
 0x177   : > { %675 = vrcp.f32 %v387_v26 }
 0x178   : > { %677 = vrcp.f32 %v388_v27 }
 0x181   : > { %v676_v28 = vpop.eup %675 }
 0x182   : > { %v678_v30 = vpop.eup %677  ;;  %v393_v31 = vmul.f32 %v676_v28, %v374_v18 }
 0x183   : > { %v394_v32 = vmul.f32 %v678_v30, %v376_v20 }
 0x184   : > { %v396_v33 = vadd.f32 %v395_v29, %v393_v31 }
 0x185   : > { %v397_v34 = vadd.f32 %v395_v29, %v394_v32 }
 0x186   : > { %398 = vst [vmem:[%s239_s4] sm:$0xff] %v396_v33 }
 0x187   : > { %399 = vst [vmem:[%s239_s4 + $0x8] sm:$0xff] %v397_v34 }
 0x188   : > { %778 = shalt.err (!%p775_p4)
}
 0x189   : > { %s779_s5 = scalar_lea.hbm %s1106_s26, 256  ;;  %s783_s25 = scalar_lea.hbm %s1158_s3, 512 }
 0x18a   : > { %p780_p8 = scmp.ne.s32.totalorder %s1106_s26, %s779_s5  ;;  %p784_p10 = scmp.lt.u32.totalorder %s1106_s26, %s1158_s3 }
 0x18b   : > { %p785_p11 = scmp.lt.u32.totalorder %s783_s25, %s779_s5  ;;  %p787_p1 = scmp.lt.u32.totalorder %s779_s5, %s1106_s26 }
 0x18c   : > { %p781_p12 = pnand %p780_p8, %p1178_p0 }
 0x18d   : > { %p786_p7 = por %p785_p11, %p784_p10 }
 0x18e   : > { %p782_p5 = pneg %p781_p12 }
 0x18f   : > { %p788_p6 = por %p787_p1, %p786_p7 }
 0x191   : > { %p789_p2 = pnand %p788_p6, %p782_p5 }
 0x193   : > { %792 = shalt.err (!%p789_p2)
}
 0x194   : > { %570 = dma.vmem_to_hbm [thread:$0]  (%p1178_p0), %s1108_s6, 256, %s1106_s26, %s401_s30  }
 0x195 PF: > { %s429_s18 = sand.u32 1, %s835_s12   ;;  %p1179_p3 = scmp.ne.s32.totalorder %s1167_s24, 0 }
 0x196   : > { %p1180_p9 = scmp.ge.s32.totalorder %s855_s17, 2  ;;  %s430_s22 = scalar_lea.sflag [#allocation4], %s429_s18 }
 0x198   : > { %p584_p13 = pnand %p1180_p9, %p1179_p3 }
 0x19a   : > { %830 = dma.done.wait (!%p584_p13), %s430_s22, 256  }
 0x19b   : > { %832 = vsyncadd (!%p584_p13), %s430_s22, 4294967040  ;;  %s18_s17 = sadd.s32 1, %s855_s17   ;;  %s1181_s12 = smov %s839_s13 }
 0x19c   : > { %p15_p4 = scmp.ge.s32.totalorder %s18_s17, 4   ;;  %s1182_s13 = smov %s843_s14 }
 0x19d   : > { %s1183_s14 = smov %s1034_s27  ;;  %s1184_s15 = smov %s851_s16 }
 0x19e   : > { %s1185_s16 = smov %s1187_s21  ;;  %17 = sbr.rel (!%p15_p4) target bundleno = 6 (0x6), region = 86 }
 0x1a5   :  { %435 = vsyncpa [#allocation3], 1 }
 0x1a6   :  { %437 = vsyncpa [#allocation3 + $0x1], 1 }
 0x1a7   :  { %438 = vsyncpa [#allocation6], 1 }
 0x1a8   :  { %439 = vsyncpa [#allocation4], 1 }
 0x1a9   :  { %441 = vsyncpa [#allocation4 + $0x1], 1 }

</bundles_post_ra>
